<compile_context>
chip_gen: v5e
topology: v5e:2x2
jax: 0.10.0
libtpu: 0.0.40
codegen_flags: <defaults>
</compile_context>

<pallas_src>
import jax
import jax.numpy as jnp
from jax import lax
from jax.experimental import pallas as pl
from jax.experimental.pallas import tpu as pltpu


# ------------------------------ Pallas kernel --------------------------------

def _pool_kernel(x_t_ref, x_s_ref, sel_ref, out_t_ref, out_s_ref):
    """Accumulate per-window sums: out[(ri)] += x_tile @ sel  (MXU matmul)."""
    bi = pl.program_id(1)

    @pl.when(bi == 0)
    def _init():
        out_t_ref[...] = jnp.zeros_like(out_t_ref)
        out_s_ref[...] = jnp.zeros_like(out_s_ref)

    sel = sel_ref[...]                                   # (block_b, L), 0/1 in input dtype
    out_t_ref[...] += jnp.dot(x_t_ref[...], sel, preferred_element_type=jnp.float32)
    out_s_ref[...] += jnp.dot(x_s_ref[...], sel, preferred_element_type=jnp.float32)


# ----------------------------- tiling / VMEM helpers -------------------------

def _vmem_budget():
    cap = 64 << 20                                       # conservative fallback (v7x-sized)
    try:
        info = pltpu.get_tpu_info()
        cap = int(getattr(info, "vmem_capacity_bytes", cap) or cap)
    except Exception:
        pass
    # Leave headroom for Mosaic internal scratch / output buffers:
    # ~48 MiB on 64-MiB parts (v7x), ~96 MiB on 128-MiB parts (v5e/v6e).
    return int(cap * 3 // 4)


def _vmem_estimate(rows_tile, block_b, itemsize):
    x_tiles = 2 * 2 * rows_tile * block_b * itemsize     # x_t + x_s, double-buffered
    sel_tile = 2 * block_b * 128 * itemsize              # lane-padded (L < 128), 2 bufs worst case
    out_tiles = 2 * 2 * max(rows_tile, 8) * 128 * 4      # two f32 outputs, lane-padded, 2 bufs
    return x_tiles + sel_tile + out_tiles + (2 << 20)    # misc headroom


def _choose_tiles(NC, B, S, itemsize, budget, max_block_rows, max_block_b):
    # Dtype-aware sublane alignment for the row tile (bf16 packs 2 rows / sublane, int8 4).
    row_align = {1: 32, 2: 16, 4: 8}.get(itemsize, 8)

    # block_b must divide B, be a multiple of S^2 (so the window-selector pattern repeats
    # identically in every bi tile -> single resident selector tile), and be a multiple of
    # 128 (lane alignment) or the full extent B.
    period = S * S
    bb_all = [d for d in range(period, B + 1, period)
              if B % d == 0 and (d % 128 == 0 or d == B)]
    if not bb_all:
        bb_all = [B]
    rt_all = [d for d in range(row_align, NC + 1, row_align) if NC % d == 0]
    if not rt_all:
        rt_all = [NC]

    bb_c = sorted([d for d in bb_all if d <= max_block_b], reverse=True) or [min(bb_all)]
    rt_c = sorted([d for d in rt_all if d <= max_block_rows], reverse=True) or [min(rt_all)]

    for bb in bb_c:
        for rt in rt_c:
            if _vmem_estimate(rt, bb, itemsize) <= budget:
                return rt, bb
    return rt_c[-1], bb_c[-1]


# ----------------------------- pooling pallas_call ---------------------------

def _pooled_window_sums(x_t, x_s, S, div, *, max_block_rows, max_block_b):
    """Returns (sum_t, sum_s): (N*C, L) f32 per-window SUMS (scaling deferred)."""
    NC, B = x_t.shape
    sb = S // div
    L = div * div
    itemsize = jnp.dtype(x_t.dtype).itemsize

    budget = _vmem_budget()
    rows_tile, block_b = _choose_tiles(NC, B, S, itemsize, budget,
                                       max_block_rows, max_block_b)

    # Window selector tile (block_b, L): sel[j, l] = 1 iff voxel (bi*block_b + j) lies in
    # local window l.  Voxel index b = d*S^2 + h*S + w; window l = (h//sb)*div + (w//sb);
    # the pattern depends only on b mod S^2 and block_b % S^2 == 0, so one tile serves
    # every bi block (constant index_map -> fetched once, stays resident).
    idx = jnp.arange(block_b, dtype=jnp.int32) % (S * S)
    h = idx // S
    w = idx % S
    win = (h // sb) * div + (w // sb)
    sel = (win[:, None] == jnp.arange(L, dtype=jnp.int32)[None, :]).astype(x_t.dtype)

    grid = (NC // rows_tile, B // block_b)

    x_spec = pl.BlockSpec((rows_tile, block_b), lambda ri, bi: (ri, bi))
    sel_spec = pl.BlockSpec((block_b, L), lambda ri, bi: (0, 0))        # resident
    out_spec = pl.BlockSpec((rows_tile, L), lambda ri, bi: (ri, 0))     # resident across bi

    est = _vmem_estimate(rows_tile, block_b, itemsize)
    vmem_limit = int(min(budget, max(est + (8 << 20), 32 << 20)))
    vmem_limit = max(vmem_limit, est)

    cost = pl.CostEstimate(
        flops=int(2 * 2 * NC * B * L),                                  # two pooling matmuls
        transcendentals=0,
        bytes_accessed=int(2 * NC * B * itemsize + block_b * L * itemsize + 2 * NC * L * 4),
    )

    sum_t, sum_s = pl.pallas_call(
        _pool_kernel,
        out_shape=(jax.ShapeDtypeStruct((NC, L), jnp.float32),
                   jax.ShapeDtypeStruct((NC, L), jnp.float32)),
        grid_spec=pltpu.PrefetchScalarGridSpec(
            num_scalar_prefetch=0,
            grid=grid,
            in_specs=[x_spec, x_spec, sel_spec],
            out_specs=(out_spec, out_spec)),
        compiler_params=pltpu.CompilerParams(
            # Row axis independent per output block -> parallel (megacore on v7x);
            # bi is the reduction axis the output block is resident across -> arbitrary.
            dimension_semantics=("parallel", "arbitrary"),
            vmem_limit_bytes=vmem_limit),
        cost_estimate=cost,
    )(x_t, x_s, sel)
    return sum_t, sum_s


# ------------------------------- JAX epilogue ---------------------------------

def _log_softmax(x):
    m = jnp.max(x, axis=-1, keepdims=True)
    z = x - m
    return z - jnp.log(jnp.sum(jnp.exp(z), axis=-1, keepdims=True))


def _mean_var_norm(x):
    # torch: in_logit / in_logit.std(1).unsqueeze(1)  (unbiased std, ddof=1, no eps)
    k = x.shape[1]
    mu = jnp.mean(x, axis=1, keepdims=True)
    var = jnp.sum((x - mu) ** 2, axis=1, keepdims=True) / (k - 1)
    return x * lax.rsqrt(var)


def _l2_normalize_rows(x, eps=1e-12):
    # torch.nn.functional.normalize(x)  (p=2, dim=1)
    sq = jnp.sum(x * x, axis=1, keepdims=True)
    return x * lax.rsqrt(jnp.maximum(sq, eps * eps))


def _gram(f):
    sq = jnp.sum(f * f, axis=1, keepdims=True)
    return sq + sq.T - 2.0 * (f @ f.T)


def _gld_epilogue(sum_t, sum_s, params, yy, *, alpha, beta, S, div, N, C):
    sb = S // div
    L = div * div
    NL = N * L
    bsz = N + NL
    wt1, bt1, wt2, bt2, ws1, bs1, ws2, bs2 = params
    f32 = jnp.float32
    scale = 1.0 / float(S * sb * sb)                 # deferred AvgPool normalization

    def rows(acc):
        loc = (acc.astype(f32) * scale).reshape(N, C, L)         # window means
        glob = jnp.mean(loc, axis=2)                              # (N, C) == global pool
        locr = jnp.transpose(loc, (0, 2, 1)).reshape(N * L, C)    # torch flatten order
        return jnp.concatenate([glob, locr], axis=0)              # (bsz, C)

    t_rows = rows(sum_t)
    s_rows = rows(sum_s)

    # 1x1x1 Conv3d heads == channel matmuls
    def heads(x, w1, b1, w2, b2):
        h = x @ w1.astype(f32).T + b1.astype(f32)
        return h @ w2.astype(f32).T + b2.astype(f32)

    t_pen = heads(t_rows, wt1, bt1, wt2, bt2)
    s_pen = heads(s_rows, ws1, bs1, ws2, bs2)

    t_logits = _log_softmax(t_pen)                   # == torch.cat((global, local), 0) logits
    s_logits = _log_softmax(s_pen)

    t_g_pen, t_l_pen = t_pen[:N], t_pen[N:]
    s_g_pen, s_l_pen = s_pen[:N], s_pen[N:]
    s_g_logit = s_logits[:N]

    # TODO(synk): my_KLDivLoss is not defined in the provided source; using the standard
    # TSAN definition nn.KLDivLoss(reduction='sum')(x, y + 1e-16) / N.
    y = yy.astype(f32) + 1e-16
    task = jnp.sum(y * (jnp.log(y) - s_g_logit)) / N

    def kl_batchmean(t_p, s_p, denom):
        t_ = _log_softmax(_mean_var_norm(t_p))
        s_ = _log_softmax(_mean_var_norm(s_p))
        return jnp.sum(jnp.exp(t_) * (t_ - s_)) / denom

    global_loss = kl_batchmean(t_g_pen, s_g_pen, N)
    local_loss = kl_batchmean(t_l_pen, s_l_pen, NL)

    G_s = _l2_normalize_rows(_gram(s_logits))
    G_t = jnp.nan_to_num(_l2_normalize_rows(_gram(t_logits)), nan=1e-8)
    relation = jnp.sum((G_t - G_s) ** 2) / (bsz * bsz)

    distill = alpha * global_loss + L * local_loss + beta * relation
    return (1.0 - alpha) * task, distill


# --------------------------------- top level ----------------------------------

def gld_loss(t_f, s_f, params, yy, *, alpha=0.7, beta=500.0, spatial_size=24, div=2,
             max_block_rows=512, max_block_b=8192):
    N, C, D, H, W = t_f.shape
    S = spatial_size
    assert D == S and H == S and W == S
    assert S % div == 0
    NC = N * C
    B = S * S * S

    # Free, contiguous reshape: no HBM relayout, native dtype DMA'd straight to the MXU.
    x_t = t_f.reshape(NC, B)
    x_s = s_f.reshape(NC, B)

    sum_t, sum_s = _pooled_window_sums(
        x_t, x_s, S, div, max_block_rows=max_block_rows, max_block_b=max_block_b)

    return _gld_epilogue(sum_t, sum_s, params, yy, alpha=float(alpha), beta=float(beta),
                         S=S, div=div, N=N, C=C)


# ------------------------- pure-JAX reference (same math) ---------------------

def gld_loss_reference(t_f, s_f, params, yy, *, alpha, beta, spatial_size, div):
    N, C = t_f.shape[0], t_f.shape[1]
    S = spatial_size
    sb = S // div
    L = div * div
    wt1, bt1, wt2, bt2, ws1, bs1, ws2, bs2 = params
    t_f = t_f.astype(jnp.float32)
    s_f = s_f.astype(jnp.float32)

    def local_pool(x):
        x = x.reshape(N, C, S, div, sb, div, sb).mean(axis=(2, 4, 6))  # (N, C, div, div)
        return x.reshape(N, C, L)

    def heads(x, w1, b1, w2, b2):
        return (x @ w1.T + b1) @ w2.T + b2

    t_loc, s_loc = local_pool(t_f), local_pool(s_f)
    t_glob, s_glob = t_loc.mean(axis=2), s_loc.mean(axis=2)
    t_lr = jnp.transpose(t_loc, (0, 2, 1)).reshape(N * L, C)
    s_lr = jnp.transpose(s_loc, (0, 2, 1)).reshape(N * L, C)

    t_g_pen = heads(t_glob, wt1, bt1, wt2, bt2)
    t_l_pen = heads(t_lr, wt1, bt1, wt2, bt2)
    s_g_pen = heads(s_glob, ws1, bs1, ws2, bs2)
    s_l_pen = heads(s_lr, ws1, bs1, ws2, bs2)

    lsm = lambda x: jax.nn.log_softmax(x, axis=1)
    t_logits = jnp.concatenate([lsm(t_g_pen), lsm(t_l_pen)], axis=0)
    s_logits = jnp.concatenate([lsm(s_g_pen), lsm(s_l_pen)], axis=0)

    y = yy.astype(jnp.float32) + 1e-16
    task = jnp.sum(y * (jnp.log(y) - lsm(s_g_pen))) / N

    def mvn(x):
        return x / jnp.std(x, axis=1, ddof=1, keepdims=True)

    def kl(tp, sp, denom):
        t_, s_ = lsm(mvn(tp)), lsm(mvn(sp))
        return jnp.sum(jnp.exp(t_) * (t_ - s_)) / denom

    global_loss = kl(t_g_pen, s_g_pen, N)
    local_loss = kl(t_l_pen, s_l_pen, N * L)

    def gram(f):
        sq = jnp.sum(f * f, axis=1, keepdims=True)
        G = sq + sq.T - 2.0 * (f @ f.T)
        nrm = jnp.sqrt(jnp.sum(G * G, axis=1, keepdims=True))
        return G / jnp.maximum(nrm, 1e-12)

    G_s = gram(s_logits)
    G_t = jnp.nan_to_num(gram(t_logits), nan=1e-8)
    bsz = N + N * L
    relation = jnp.sum((G_t - G_s) ** 2) / (bsz * bsz)

    distill = alpha * global_loss + L * local_loss + beta * relation
    return (1.0 - alpha) * task, distill


# t_f1/t_f2 and s_f1/s_f2 are callables in the torch forward; here they are modeled as
# 1x1x1 Conv3d heads (C -> hidden -> num_classes), initialized deterministically.
def init_params(key, c, hidden, num_classes):
    ks = jax.random.split(key, 8)
    w = lambda k, shape, s: jax.random.normal(k, shape, jnp.float32) * s
    wt1 = w(ks[0], (hidden, c), 0.2)
    bt1 = w(ks[1], (hidden,), 0.1)
    wt2 = w(ks[2], (num_classes, hidden), 0.2)
    bt2 = w(ks[3], (num_classes,), 0.1)
    ws1 = w(ks[4], (hidden, c), 0.2)
    bs1 = w(ks[5], (hidden,), 0.1)
    ws2 = w(ks[6], (num_classes, hidden), 0.2)
    bs2 = w(ks[7], (num_classes,), 0.1)
    return (wt1, bt1, wt2, bt2, ws1, bs1, ws2, bs2)


if __name__ == "__main__":
    key = jax.random.PRNGKey(0)
    N, C, S, DIV = 2, 8, 8, 2          # small: spatial_size=8, div=2 -> num_local=4
    HIDDEN, K = 32, 8

    k1, k2, k3, k4 = jax.random.split(key, 4)
    t_f = jax.random.normal(k1, (N, C, S, S, S), jnp.float32)   # teacher feature map (NCDHW)
    s_f = jax.random.normal(k2, (N, C, S, S, S), jnp.float32)   # student feature map (NCDHW)
    yy = jax.nn.softmax(jax.random.normal(k3, (N, K), jnp.float32), axis=-1)  # soft targets
    params = init_params(k4, C, HIDDEN, K)

    # Small tile caps so the tiny demo still exercises the (row, window) grid, the
    # pl.when init at bi==0 and the resident-output accumulation path: grid = (2, 4).
    task_loss, distill_loss = gld_loss(
        t_f, s_f, params, yy, alpha=0.7, beta=500.0, spatial_size=S, div=DIV,
        max_block_rows=8, max_block_b=128)
    task_loss, distill_loss = jax.block_until_ready((task_loss, distill_loss))

    ref_task, ref_distill = gld_loss_reference(
        t_f, s_f, params, yy, alpha=0.7, beta=500.0, spatial_size=S, div=DIV)
    assert jnp.allclose(task_loss, ref_task, rtol=2e-2, atol=2e-3), (task_loss, ref_task)
    assert jnp.allclose(distill_loss, ref_distill, rtol=2e-2, atol=2e-3), (distill_loss, ref_distill)
    print("KERNEL_OK")
</pallas_src>

<mosaic_0001>
module attributes {stable_mosaic.version = 11 : i64} {
  func.func @_pool_kernel(%arg0: i32, %arg1: i32, %arg2: memref<8x128xf32, #tpu.memory_space<vmem>>, %arg3: memref<8x128xf32, #tpu.memory_space<vmem>>, %arg4: memref<128x4xf32, #tpu.memory_space<vmem>>, %arg5: memref<8x4xf32, #tpu.memory_space<vmem>>, %arg6: memref<8x4xf32, #tpu.memory_space<vmem>>) attributes {dimension_semantics = [#tpu.dimension_semantics<parallel>, #tpu.dimension_semantics<arbitrary>], iteration_bounds = array<i64: 2, 4>, scalar_prefetch = 0 : i64, scratch_operands = 0 : i64, tpu.core_type = #tpu.core_type<tc>, window_params = [{transform_indices = @transform_0, window_bounds = array<i64: 8, 128>}, {transform_indices = @transform_1, window_bounds = array<i64: 8, 128>}, {pipeline_mode = #tpu.pipeline_mode<synchronous>, transform_indices = @transform_2, window_bounds = array<i64: 128, 4>}, {transform_indices = @transform_3, window_bounds = array<i64: 8, 4>}, {transform_indices = @transform_4, window_bounds = array<i64: 8, 4>}]} {
    %c0_i32 = arith.constant 0 : i32
    %0 = arith.cmpi eq, %arg1, %c0_i32 : i32
    %1 = arith.extui %0 : i1 to i32
    %c0_i32_0 = arith.constant 0 : i32
    %2 = arith.cmpi ne, %1, %c0_i32_0 : i32
    scf.if %2 {
      %cst_15 = arith.constant 0.000000e+00 : f32
      %14 = vector.broadcast %cst_15 : f32 to vector<8x4xf32>
      %c0_16 = arith.constant 0 : index
      %c0_17 = arith.constant 0 : index
      %15 = vector.load %arg5[%c0_16, %c0_17] : memref<8x4xf32, #tpu.memory_space<vmem>>, vector<8x4xf32>
      tpu.vector_store %arg5[%c0_16, %c0_17], %14 {strides = array<i32>} : memref<8x4xf32, #tpu.memory_space<vmem>>, vector<8x4xf32>,
      %cst_18 = arith.constant 0.000000e+00 : f32
      %16 = vector.broadcast %cst_18 : f32 to vector<8x4xf32>
      %c0_19 = arith.constant 0 : index
      %c0_20 = arith.constant 0 : index
      %17 = vector.load %arg6[%c0_19, %c0_20] : memref<8x4xf32, #tpu.memory_space<vmem>>, vector<8x4xf32>
      tpu.vector_store %arg6[%c0_19, %c0_20], %16 {strides = array<i32>} : memref<8x4xf32, #tpu.memory_space<vmem>>, vector<8x4xf32>,
    } else {
    }
    %c0 = arith.constant 0 : index
    %c0_1 = arith.constant 0 : index
    %3 = vector.load %arg4[%c0, %c0_1] : memref<128x4xf32, #tpu.memory_space<vmem>>, vector<128x4xf32>
    %c0_2 = arith.constant 0 : index
    %c0_3 = arith.constant 0 : index
    %4 = vector.load %arg5[%c0_2, %c0_3] : memref<8x4xf32, #tpu.memory_space<vmem>>, vector<8x4xf32>
    %c0_4 = arith.constant 0 : index
    %c0_5 = arith.constant 0 : index
    %5 = vector.load %arg2[%c0_4, %c0_5] : memref<8x128xf32, #tpu.memory_space<vmem>>, vector<8x128xf32>
    %cst = arith.constant dense<0.000000e+00> : vector<8x4xf32>
    %6 = tpu.matmul %5, %3, %cst {dimension_numbers = #tpu.dot_dimension_numbers<[1], [0], [0], [1], [0, 0, 1, 1], [], []>} : vector<8x128xf32>, vector<128x4xf32>, vector<8x4xf32> -> vector<8x4xf32>
    %7 = arith.addf %4, %6 : vector<8x4xf32>
    %c0_6 = arith.constant 0 : index
    %c0_7 = arith.constant 0 : index
    %8 = vector.load %arg5[%c0_6, %c0_7] : memref<8x4xf32, #tpu.memory_space<vmem>>, vector<8x4xf32>
    tpu.vector_store %arg5[%c0_6, %c0_7], %7 {strides = array<i32>} : memref<8x4xf32, #tpu.memory_space<vmem>>, vector<8x4xf32>,
    %c0_8 = arith.constant 0 : index
    %c0_9 = arith.constant 0 : index
    %9 = vector.load %arg6[%c0_8, %c0_9] : memref<8x4xf32, #tpu.memory_space<vmem>>, vector<8x4xf32>
    %c0_10 = arith.constant 0 : index
    %c0_11 = arith.constant 0 : index
    %10 = vector.load %arg3[%c0_10, %c0_11] : memref<8x128xf32, #tpu.memory_space<vmem>>, vector<8x128xf32>
    %cst_12 = arith.constant dense<0.000000e+00> : vector<8x4xf32>
    %11 = tpu.matmul %10, %3, %cst_12 {dimension_numbers = #tpu.dot_dimension_numbers<[1], [0], [0], [1], [0, 0, 1, 1], [], []>} : vector<8x128xf32>, vector<128x4xf32>, vector<8x4xf32> -> vector<8x4xf32>
    %12 = arith.addf %9, %11 : vector<8x4xf32>
    %c0_13 = arith.constant 0 : index
    %c0_14 = arith.constant 0 : index
    %13 = vector.load %arg6[%c0_13, %c0_14] : memref<8x4xf32, #tpu.memory_space<vmem>>, vector<8x4xf32>
    tpu.vector_store %arg6[%c0_13, %c0_14], %12 {strides = array<i32>} : memref<8x4xf32, #tpu.memory_space<vmem>>, vector<8x4xf32>,
    return
  }
  func.func @transform_0(%arg0: i32, %arg1: i32) -> (i32, i32) {
    %c0_i32 = arith.constant 0 : i32
    return %arg0, %arg1 : i32, i32
  }
  func.func @transform_1(%arg0: i32, %arg1: i32) -> (i32, i32) {
    %c0_i32 = arith.constant 0 : i32
    return %arg0, %arg1 : i32, i32
  }
  func.func @transform_2(%arg0: i32, %arg1: i32) -> (i32, i32) {
    %c0_i32 = arith.constant 0 : i32
    %c0_i32_0 = arith.constant 0 : i32
    %c0_i32_1 = arith.constant 0 : i32
    return %c0_i32, %c0_i32_0 : i32, i32
  }
  func.func @transform_3(%arg0: i32, %arg1: i32) -> (i32, i32) {
    %c0_i32 = arith.constant 0 : i32
    %c0_i32_0 = arith.constant 0 : i32
    return %arg0, %c0_i32 : i32, i32
  }
  func.func @transform_4(%arg0: i32, %arg1: i32) -> (i32, i32) {
    %c0_i32 = arith.constant 0 : i32
    %c0_i32_0 = arith.constant 0 : i32
    return %arg0, %c0_i32 : i32, i32
  }
}

</mosaic_0001>

<bundles_post_ra>
// kernel: tpu_custom_call.1
= control target key start
LH: loop header
LB: loop body
LE: loop exit
PB: predicated region body
PF: predicated region fallthrough
CT: control target
= control target key end

     0   :  { %s573_s15 = smov 0   ;;  %s575_s16 = smov 0   ;;  %s694_s0 = inlined_call_operand.vmem [shape: f32[16,512], index: 0, kind: input, shape index: {}]   ;;  %s695_s1 = inlined_call_operand.vmem [shape: f32[16,512], index: 1, kind: input, shape index: {}]   ;;  %s696_s2 = inlined_call_operand.vmem [shape: f32[128,4], index: 2, kind: input, shape index: {}]   ;;  %s697_s3 = inlined_call_operand.vmem [shape: f32[16,4], index: 3, kind: output, shape index: {0}]   ;;  %s698_s4 = inlined_call_operand.vmem [shape: f32[16,4], index: 4, kind: output, shape index: {1}]  }
   0x1   :  { %s577_s17 = smov 0   ;;  %s579_s18 = smov 0  }
   0x2   :  { %s581_s19 = smov 0  }
   0x3 LB: > { %s24_s20 = sadd.s32 1, %s537_s17  ;;  %s27_s21 = sadd.s32 1, %s541_s18  ;;  %s545_s19 = sphi %s581_s19, %s15_s19   ;;  %s541_s18 = sphi %s579_s18, %s702_s18   ;;  %s537_s17 = sphi %s577_s17, %s701_s17   ;;  %s533_s16 = sphi %s575_s16, %s700_s16   ;;  %s529_s15 = sphi %s573_s15, %s699_s15  }
   0x4   : > { %p25_p0 = scmp.ge.s32.totalorder %s24_s20, 4  ;;  %p456_p1 = scmp.ge.s32.totalorder %s545_s19, 1 }
   0x5   : > { %p197_p2 = scmp.lt.s32.totalorder %s545_s19, 9 }
   0x6   : > { %s704_s20 = smov (%p25_p0, %s24_s20), 0  ;;  %s706_s21 = smov (!%p25_p0, %s27_s21), %s541_s18 }
   0x7   : > { %p198_p3 = pnand %p456_p1, %p197_p2  ;;  %p29_p4 = scmp.ge.s32.totalorder %s706_s21, 2 }
   0x8   : > { %p237_p5 = scmp.lt.s32.totalorder (!%p198_p3), %s533_s16, 1  ;;  %p239_p6 = scmp.lt.s32.totalorder (!%p198_p3), %s529_s15, 3 }
   0x9   : > { %s708_s21 = smov (%p29_p4, %s706_s21), 0  ;;  %201 = sbr.rel (%p198_p3) target bundleno = 190 (0xbe), region = 32 }
   0xa   : > { %p463_p7 = scmp.ne.s32.totalorder (!%p198_p3), %s529_s15, 0 }
   0xe   : > { %s710_s16 = smov (!%p237_p5, %s533_s16), 1 }
   0xf   : > { %s240_s22 = scalar_select %p239_p6, %s529_s15, 3 }
  0x10   : > { %s457_s23 = sshll.u32 %s710_s16, 2  ;;  %s461_s24 = sshll.u32 %s710_s16, 3 }
  0x11   : > { %s242_s25 = sadd.s32 %s457_s23, %s240_s22  ;;  %s606_s28 = scalar_lea.vmem %s697_s3, %s461_s24 }
  0x12   : > { %s458_s29 = sshll.u32 %s242_s25, 3  ;;  %s611_s6 = scalar_lea.vmem %s698_s4, %s461_s24 }
  0x13   : > { %s616_s9 = scalar_lea.vmem %s694_s0, %s458_s29  ;;  %s621_s12 = scalar_lea.vmem %s695_s1, %s458_s29 }
  0x14   : > { %264 = sbr.rel (%p463_p7) target bundleno = 28 (0x1c), region = 36 }
  0x19   : > { %vm265_vm0 = vcmask 31744   ;;  %v547_v0 = vmov 0.0  }
  0x1a   : > { %266 = vst.msk [vmem:[%s606_s28] sm:$0xff] %vm265_vm0, %v547_v0 }
  0x1b   : > { %267 = vst.msk [vmem:[%s611_s6] sm:$0xff] %vm265_vm0, %v547_v0 }
  0x1c PF: > { %v283_v1 = vld [vmem:[%s696_s2 + $0x78] sm:$0xff]  ;;  %v282_v2 = vld [vmem:[%s696_s2 + $0x70] sm:$0xff]  ;;  %v281_v3 = vld [vmem:[%s696_s2 + $0x68] sm:$0xff]  ;;  %vm307_vm1 = vcmask 31744  }
  0x1d   : > { %286 = vmatpush.msra.mxu0 %v283_v1  ;;  %311 = vmatpush.msra.mxu1 %v283_v1  ;;  %v280_v4 = vld [vmem:[%s696_s2 + $0x60] sm:$0xff]  ;;  %v279_v5 = vld [vmem:[%s696_s2 + $0x58] sm:$0xff]  ;;  %v278_v6 = vld [vmem:[%s696_s2 + $0x50] sm:$0xff] }
  0x1e   : > { %v277_v7 = vld [vmem:[%s696_s2 + $0x48] sm:$0xff]  ;;  %v276_v8 = vld [vmem:[%s696_s2 + $0x40] sm:$0xff]  ;;  %v275_v9 = vld [vmem:[%s696_s2 + $0x38] sm:$0xff] }
  0x1f   : > { %287 = vmatpush.msra.mxu0 %v282_v2  ;;  %312 = vmatpush.msra.mxu1 %v282_v2  ;;  %v274_v10 = vld [vmem:[%s696_s2 + $0x30] sm:$0xff]  ;;  %v273_v11 = vld [vmem:[%s696_s2 + $0x28] sm:$0xff]  ;;  %v272_v12 = vld [vmem:[%s696_s2 + $0x20] sm:$0xff] }
  0x20   : > { %v271_v13 = vld [vmem:[%s696_s2 + $0x18] sm:$0xff]  ;;  %v270_v14 = vld [vmem:[%s696_s2 + $0x10] sm:$0xff]  ;;  %v269_v15 = vld [vmem:[%s696_s2 + $0x8] sm:$0xff] }
  0x21   : > { %288 = vmatpush.msra.mxu0 %v281_v3  ;;  %313 = vmatpush.msra.mxu1 %v281_v3  ;;  %v268_v16 = vld [vmem:[%s696_s2] sm:$0xff] }
  0x22   : > { %v285_v17 = vld [vmem:[%s616_s9] sm:$0xff] }
  0x23   : > { %289 = vmatpush.msra.mxu0 %v280_v4  ;;  %314 = vmatpush.msra.mxu1 %v280_v4  ;;  %v310_v18 = vld [vmem:[%s621_s12] sm:$0xff] }
  0x24   : > { %v284_v19 = vld [vmem:[%s606_s28] sm:$0xff] }
  0x25   : > { %290 = vmatpush.msra.mxu0 %v279_v5  ;;  %315 = vmatpush.msra.mxu1 %v279_v5  ;;  %v309_v20 = vld [vmem:[%s611_s6] sm:$0xff] }
  0x27   : > { %291 = vmatpush.msra.mxu0 %v278_v6  ;;  %316 = vmatpush.msra.mxu1 %v278_v6 }
  0x29   : > { %292 = vmatpush.msra.mxu0 %v277_v7  ;;  %317 = vmatpush.msra.mxu1 %v277_v7 }
  0x2b   : > { %293 = vmatpush.msra.mxu0 %v276_v8  ;;  %318 = vmatpush.msra.mxu1 %v276_v8 }
  0x2d   : > { %294 = vmatpush.msra.mxu0 %v275_v9  ;;  %319 = vmatpush.msra.mxu1 %v275_v9 }
  0x2f   : > { %295 = vmatpush.msra.mxu0 %v274_v10  ;;  %320 = vmatpush.msra.mxu1 %v274_v10 }
  0x31   : > { %296 = vmatpush.msra.mxu0 %v273_v11  ;;  %321 = vmatpush.msra.mxu1 %v273_v11 }
  0x33   : > { %297 = vmatpush.msra.mxu0 %v272_v12  ;;  %322 = vmatpush.msra.mxu1 %v272_v12 }
  0x35   : > { %298 = vmatpush.msra.mxu0 %v271_v13  ;;  %323 = vmatpush.msra.mxu1 %v271_v13 }
  0x37   : > { %299 = vmatpush.msra.mxu0 %v270_v14  ;;  %324 = vmatpush.msra.mxu1 %v270_v14 }
  0x39   : > { %300 = vmatpush.msra.mxu0 %v269_v15  ;;  %325 = vmatpush.msra.mxu1 %v269_v15 }
  0x3b   : > { %301 = vmatpush.msra.mxu0 %v268_v16  ;;  %326 = vmatpush.msra.mxu1 %v268_v16 }
  0x3c   : > { %302 = vmatmul.f32.vlgmr.msra.gmra.mxu0 %v285_v17  ;;  %327 = vmatmul.f32.vlgmr.msra.gmra.mxu1 %v310_v18 }
  0xb9   : > { %v303_v21 = vpop.f32.mrf.mxu0  ;;  %v328_v22 = vpop.f32.mrf.mxu1 }
  0xba   : > { %v306_v23 = vadd.f32 %v303_v21, %v284_v19  ;;  %v331_v24 = vadd.f32 %v328_v22, %v309_v20 }
  0xbc   : > { %308 = vst.msk [vmem:[%s606_s28] sm:$0xff] %vm307_vm1, %v306_v23 }
  0xbd   : > { %332 = vst.msk [vmem:[%s611_s6] sm:$0xff] %vm307_vm1, %v331_v24 }
  0xbe PF: > { %s15_s19 = sadd.s32 1, %s545_s19   ;;  %s699_s15 = smov %s537_s17 }
  0xbf   : > { %p12_p8 = scmp.ge.s32.totalorder %s15_s19, 10   ;;  %s700_s16 = smov %s541_s18 }
  0xc0   : > { %s701_s17 = smov %s704_s20  ;;  %s702_s18 = smov %s708_s21 }
  0xc1   :  { %14 = sbr.rel (!%p12_p8) target bundleno = 3 (0x3), region = 81 }

</bundles_post_ra>
